<compile_context>
chip_gen: v7x
topology: tpu7x:2x2x1
jax: 0.10.0
libtpu: 0.0.40
codegen_flags: <defaults>
</compile_context>

<pallas_src>
import functools

import jax
import jax.numpy as jnp
from jax.experimental import pallas as pl
from jax.experimental.pallas import tpu as pltpu

LN_EPS = 1e-12                      # espnet LayerNorm eps
VMEM_LIMIT = 48 * 1024 * 1024       # explicit budget: safe for v7x 64MiB physical
MAX_ROW_TILE = 512                  # row-tile sweet spot for mem-bound kernels


# ------------------------------ in-kernel utils ----------------------------- #

def _ln(x, g, b):
    """Row-wise LayerNorm in f32.  x: [rows, D], g/b: [1, D]."""
    mean = jnp.mean(x, axis=-1, keepdims=True)
    var = jnp.mean(jnp.square(x - mean), axis=-1, keepdims=True)
    return (x - mean) * jax.lax.rsqrt(var + LN_EPS) * g + b


# --------------------------------- kernels ---------------------------------- #

def _embed_kernel(x_ref, w_ref, b_ref, g_ref, beta_ref, o_ref):
    # Linear -> LayerNorm -> Dropout(identity) -> ReLU
    y = jnp.dot(x_ref[...].astype(jnp.bfloat16), w_ref[...],
                preferred_element_type=jnp.float32) + b_ref[...]
    y = _ln(y, g_ref[...], beta_ref[...])
    o_ref[...] = jnp.maximum(y, 0.0)


def _ln_qkv_kernel(e_ref, g_ref, beta_ref, wqkv_ref, bqkv_ref, o_ref):
    # Pre-LN + fused QKV projection (lane-dense 3D-wide output, bf16).
    xn = _ln(e_ref[...], g_ref[...], beta_ref[...])
    qkv = jnp.dot(xn.astype(jnp.bfloat16), wqkv_ref[...],
                  preferred_element_type=jnp.float32) + bqkv_ref[...]
    o_ref[...] = qkv.astype(o_ref.dtype)


def _attn_core_kernel(qkv_ref, o_ref, *, d):
    # Single-head attention over the whole batch in one block.
    # 1/sqrt(d_k) is already folded into Wq/bq.
    q = qkv_ref[:, :, 0:d]            # [B, T, D] bf16
    k = qkv_ref[:, :, d:2 * d]
    v = qkv_ref[:, :, 2 * d:3 * d]
    # scores: contract last dims (no explicit transpose), f32 accumulation
    s = jax.lax.dot_general(q, k, (((2,), (2,)), ((0,), (0,))),
                            preferred_element_type=jnp.float32)   # [B, T, T]
    s = s - jnp.max(s, axis=-1, keepdims=True)
    p = jnp.exp(s)
    inv = pl.reciprocal(jnp.sum(p, axis=-1, keepdims=True), approx=True)
    ctx = jax.lax.dot_general(p.astype(jnp.bfloat16), v,
                              (((2,), (1,)), ((0,), (0,))),
                              preferred_element_type=jnp.float32)  # [B, T, D]
    o_ref[...] = (ctx * inv).astype(o_ref.dtype)


def _proj_ffn_kernel(ctx_ref, e_ref, wo_ref, bo_ref, g_ref, beta_ref,
                     w1_ref, b1_ref, w2_ref, b2_ref, o_ref):
    # out-proj + residual  ->  LN2 + FF1(ReLU) + FF2 + residual, all fused.
    ao = jnp.dot(ctx_ref[...], wo_ref[...],
                 preferred_element_type=jnp.float32) + bo_ref[...]
    x = e_ref[...] + ao                                    # residual 1 (f32)
    xn = _ln(x, g_ref[...], beta_ref[...])
    h = jnp.dot(xn.astype(jnp.bfloat16), w1_ref[...],
                preferred_element_type=jnp.float32) + b1_ref[...]
    h = jnp.maximum(h, 0.0)
    y = jnp.dot(h.astype(jnp.bfloat16), w2_ref[...],
                preferred_element_type=jnp.float32) + b2_ref[...]
    o_ref[...] = x + y                                     # residual 2 (f32)


def _head_kernel(e_ref, g_ref, beta_ref, w_ref, b_ref, o_ref):
    # after_norm + output Linear; weight padded to >=128 lanes (sliced outside).
    xn = _ln(e_ref[...], g_ref[...], beta_ref[...])
    y = jnp.dot(xn.astype(jnp.bfloat16), w_ref[...],
                preferred_element_type=jnp.float32) + b_ref[...]
    o_ref[...] = y


# ------------------------------ pallas wrappers ------------------------------ #

def _choose_tm(m, max_tile=MAX_ROW_TILE):
    if m <= max_tile:
        return m
    for t in (512, 256, 128, 64, 32, 16, 8):
        if t <= max_tile and m % t == 0:
            return t
    return m  # TODO(synk): partial-tile path for M not a multiple of 8


def _row_tiled(kernel, row_inputs, param_inputs, out_cols,
               out_dtype=jnp.float32):
    """Run `kernel` over row tiles of M.  row_inputs: [M, C_i]; params: 2-D."""
    M = row_inputs[0].shape[0]
    tm = _choose_tm(M)
    in_specs = (
        [pl.BlockSpec((tm, a.shape[1]), lambda i: (i, 0)) for a in row_inputs]
        + [pl.BlockSpec(p.shape, lambda i: (0, 0)) for p in param_inputs])
    return pl.pallas_call(
        kernel,
        out_shape=jax.ShapeDtypeStruct((M, out_cols), out_dtype),
        grid=(pl.cdiv(M, tm),),
        in_specs=in_specs,
        out_specs=pl.BlockSpec((tm, out_cols), lambda i: (i, 0)),
        compiler_params=pltpu.CompilerParams(
            dimension_semantics=("parallel",),
            vmem_limit_bytes=VMEM_LIMIT),
    )(*row_inputs, *param_inputs)


def _attn_core(qkv, *, d):
    """qkv: [B, T, 3D] bf16 -> normalized attention context [B, T, D] bf16."""
    B, T, threeD = qkv.shape
    return pl.pallas_call(
        functools.partial(_attn_core_kernel, d=d),
        out_shape=jax.ShapeDtypeStruct((B, T, d), jnp.bfloat16),
        grid=(1,),
        in_specs=[pl.BlockSpec((B, T, threeD), lambda i: (0, 0, 0))],
        out_specs=pl.BlockSpec((B, T, d), lambda i: (0, 0, 0)),
        compiler_params=pltpu.CompilerParams(vmem_limit_bytes=VMEM_LIMIT),
    )(qkv)


# --------------------------------- parameters -------------------------------- #

def init_params(key, idim, odim, d, dff, nblocks):
    keys = iter(jax.random.split(key, 2 + 6 * nblocks))

    def dense(k, fi, fo):
        return jax.random.normal(k, (fi, fo), jnp.float32) * 0.05

    raw = {
        "embed": {"w": dense(next(keys), idim, d),
                  "b": jnp.zeros((d,), jnp.float32),
                  "ln_g": jnp.ones((d,), jnp.float32),
                  "ln_b": jnp.zeros((d,), jnp.float32)},
        "layers": [],
        "after_g": jnp.ones((d,), jnp.float32),
        "after_b": jnp.zeros((d,), jnp.float32),
        "out_w": dense(next(keys), d, odim),
        "out_b": jnp.zeros((odim,), jnp.float32),
    }
    for _ in range(nblocks):
        raw["layers"].append({
            "ln1_g": jnp.ones((d,), jnp.float32), "ln1_b": jnp.zeros((d,), jnp.float32),
            "wq": dense(next(keys), d, d), "bq": jnp.zeros((d,), jnp.float32),
            "wk": dense(next(keys), d, d), "bk": jnp.zeros((d,), jnp.float32),
            "wv": dense(next(keys), d, d), "bv": jnp.zeros((d,), jnp.float32),
            "wo": dense(next(keys), d, d), "bo": jnp.zeros((d,), jnp.float32),
            "ln2_g": jnp.ones((d,), jnp.float32), "ln2_b": jnp.zeros((d,), jnp.float32),
            "w1": dense(next(keys), d, dff), "b1": jnp.zeros((dff,), jnp.float32),
            "w2": dense(next(keys), dff, d), "b2": jnp.zeros((d,), jnp.float32),
        })
    return raw


def prepare_params(raw):
    """Fuse QKV weights, fold attention scale, pad head to 128 lanes, cast bf16."""
    d = raw["embed"]["w"].shape[1]
    scale = 1.0 / float(d) ** 0.5    # heads=1 -> d_k == attention_dim

    def row(v):
        return v.reshape(1, -1).astype(jnp.float32)

    prep = {
        "embed": {"w": raw["embed"]["w"].astype(jnp.bfloat16),
                  "b": row(raw["embed"]["b"]),
                  "g": row(raw["embed"]["ln_g"]),
                  "beta": row(raw["embed"]["ln_b"])},
        "layers": [],
    }
    for lp in raw["layers"]:
        prep["layers"].append({
            "ln1_g": row(lp["ln1_g"]), "ln1_b": row(lp["ln1_b"]),
            "wqkv": jnp.concatenate(
                [lp["wq"] * scale, lp["wk"], lp["wv"]], axis=1).astype(jnp.bfloat16),
            "bqkv": jnp.concatenate(
                [lp["bq"] * scale, lp["bk"], lp["bv"]]).reshape(1, -1),
            "wo": lp["wo"].astype(jnp.bfloat16), "bo": row(lp["bo"]),
            "ln2_g": row(lp["ln2_g"]), "ln2_b": row(lp["ln2_b"]),
            "w1": lp["w1"].astype(jnp.bfloat16), "b1": row(lp["b1"]),
            "w2": lp["w2"].astype(jnp.bfloat16), "b2": row(lp["b2"]),
        })
    odim = raw["out_w"].shape[1]
    pad_cols = max(128, ((odim + 127) // 128) * 128)
    w_pad = jnp.zeros((d, pad_cols), jnp.float32).at[:, :odim].set(raw["out_w"])
    b_pad = jnp.zeros((1, pad_cols), jnp.float32).at[:, :odim].set(raw["out_b"])
    prep["head"] = {"g": row(raw["after_g"]), "beta": row(raw["after_b"]),
                    "w": w_pad.astype(jnp.bfloat16), "b": b_pad}
    return prep


# ---------------------------------- forward ---------------------------------- #

def transformer_diarization_forward(xs, params, odim):
    """xs: [B, T, idim] f32 -> raw logits [B, T, odim] (activation=None)."""
    B, T, idim = xs.shape
    M = B * T
    x = xs.reshape(M, idim)

    emb = params["embed"]
    D = emb["w"].shape[1]
    e = _row_tiled(_embed_kernel, [x],
                   [emb["w"], emb["b"], emb["g"], emb["beta"]], D)

    for lp in params["layers"]:
        qkv = _row_tiled(_ln_qkv_kernel, [e],
                         [lp["ln1_g"], lp["ln1_b"], lp["wqkv"], lp["bqkv"]],
                         3 * D, out_dtype=jnp.bfloat16)
        ctx = _attn_core(qkv.reshape(B, T, 3 * D), d=D).reshape(M, D)
        e = _row_tiled(_proj_ffn_kernel, [ctx, e],
                       [lp["wo"], lp["bo"], lp["ln2_g"], lp["ln2_b"],
                        lp["w1"], lp["b1"], lp["w2"], lp["b2"]], D)

    head = params["head"]
    y = _row_tiled(_head_kernel, [e],
                   [head["g"], head["beta"], head["w"], head["b"]],
                   head["w"].shape[1])
    return y[:, :odim].reshape(B, T, odim)


# ------------------------------------ main ----------------------------------- #

if __name__ == "__main__":
    # Small shapes consistent with the module: B=2 sequences, T=8 frames,
    # idim=32 features, attention_dim=64, heads=1, linear_units=128,
    # num_blocks=2, odim=4 speakers.
    B, T = 2, 8
    idim, odim = 32, 4
    attention_dim, linear_units, num_blocks = 64, 128, 2

    key = jax.random.PRNGKey(0)
    kx, kp = jax.random.split(key)
    xs = jax.random.normal(kx, (B, T, idim), jnp.float32)
    raw_params = init_params(kp, idim, odim, attention_dim, linear_units, num_blocks)
    params = prepare_params(raw_params)

    fwd = jax.jit(transformer_diarization_forward, static_argnames=("odim",))
    ys = fwd(xs, params, odim=odim)
    jax.block_until_ready(ys)

    assert ys.shape == (B, T, odim), ys.shape
    assert ys.dtype == jnp.float32
    assert bool(jnp.all(jnp.isfinite(ys)))
    print("KERNEL_OK")
</pallas_src>

<mosaic_0001>
module attributes {stable_mosaic.version = 11 : i64} {
  func.func @_embed_kernel(%arg0: i32, %arg1: memref<16x32xf32, #tpu.memory_space<vmem>>, %arg2: memref<32x64xbf16, #tpu.memory_space<vmem>>, %arg3: memref<1x64xf32, #tpu.memory_space<vmem>>, %arg4: memref<1x64xf32, #tpu.memory_space<vmem>>, %arg5: memref<1x64xf32, #tpu.memory_space<vmem>>, %arg6: memref<16x64xf32, #tpu.memory_space<vmem>>) attributes {dimension_semantics = [#tpu.dimension_semantics<parallel>], iteration_bounds = array<i64: 1>, scalar_prefetch = 0 : i64, scratch_operands = 0 : i64, tpu.core_type = #tpu.core_type<tc>, window_params = [{transform_indices = @transform_0, window_bounds = array<i64: 16, 32>}, {pipeline_mode = #tpu.pipeline_mode<synchronous>, transform_indices = @transform_1, window_bounds = array<i64: 32, 64>}, {pipeline_mode = #tpu.pipeline_mode<synchronous>, transform_indices = @transform_2, window_bounds = array<i64: 1, 64>}, {pipeline_mode = #tpu.pipeline_mode<synchronous>, transform_indices = @transform_3, window_bounds = array<i64: 1, 64>}, {pipeline_mode = #tpu.pipeline_mode<synchronous>, transform_indices = @transform_4, window_bounds = array<i64: 1, 64>}, {transform_indices = @transform_5, window_bounds = array<i64: 16, 64>}]} {
    %c0 = arith.constant 0 : index
    %c0_0 = arith.constant 0 : index
    %0 = vector.load %arg1[%c0, %c0_0] : memref<16x32xf32, #tpu.memory_space<vmem>>, vector<16x32xf32>
    %1 = arith.truncf %0 : vector<16x32xf32> to vector<16x32xbf16>
    %c0_1 = arith.constant 0 : index
    %c0_2 = arith.constant 0 : index
    %2 = vector.load %arg2[%c0_1, %c0_2] : memref<32x64xbf16, #tpu.memory_space<vmem>>, vector<32x64xbf16>
    %cst = arith.constant dense<0.000000e+00> : vector<16x64xf32>
    %3 = tpu.matmul %1, %2, %cst {dimension_numbers = #tpu.dot_dimension_numbers<[1], [0], [0], [1], [0, 0, 1, 1], [], []>} : vector<16x32xbf16>, vector<32x64xbf16>, vector<16x64xf32> -> vector<16x64xf32>
    %c0_3 = arith.constant 0 : index
    %c0_4 = arith.constant 0 : index
    %4 = vector.load %arg3[%c0_3, %c0_4] : memref<1x64xf32, #tpu.memory_space<vmem>>, vector<1x64xf32>
    %5 = vector.broadcast %4 : vector<1x64xf32> to vector<16x64xf32>
    %6 = arith.addf %3, %5 : vector<16x64xf32>
    %c0_5 = arith.constant 0 : index
    %c0_6 = arith.constant 0 : index
    %7 = vector.load %arg4[%c0_5, %c0_6] : memref<1x64xf32, #tpu.memory_space<vmem>>, vector<1x64xf32>
    %c0_7 = arith.constant 0 : index
    %c0_8 = arith.constant 0 : index
    %8 = vector.load %arg5[%c0_7, %c0_8] : memref<1x64xf32, #tpu.memory_space<vmem>>, vector<1x64xf32>
    %cst_9 = arith.constant dense<0.000000e+00> : vector<16xf32>
    %9 = vector.multi_reduction <add>, %6, %cst_9 [1] : vector<16x64xf32> to vector<16xf32>
    %10 = vector.shape_cast %9 : vector<16xf32> to vector<16x1xf32>
    %cst_10 = arith.constant 6.400000e+01 : f32
    %11 = vector.broadcast %cst_10 : f32 to vector<16x1xf32>
    %12 = arith.divf %10, %11 : vector<16x1xf32>
    %13 = vector.broadcast %12 : vector<16x1xf32> to vector<16x64xf32>
    %14 = arith.subf %6, %13 : vector<16x64xf32>
    %15 = arith.mulf %14, %14 : vector<16x64xf32>
    %cst_11 = arith.constant dense<0.000000e+00> : vector<16xf32>
    %16 = vector.multi_reduction <add>, %15, %cst_11 [1] : vector<16x64xf32> to vector<16xf32>
    %17 = vector.shape_cast %16 : vector<16xf32> to vector<16x1xf32>
    %cst_12 = arith.constant 6.400000e+01 : f32
    %18 = vector.broadcast %cst_12 : f32 to vector<16x1xf32>
    %19 = arith.divf %17, %18 : vector<16x1xf32>
    %20 = vector.broadcast %12 : vector<16x1xf32> to vector<16x64xf32>
    %21 = arith.subf %6, %20 : vector<16x64xf32>
    %cst_13 = arith.constant 9.99999996E-13 : f32
    %22 = vector.broadcast %cst_13 : f32 to vector<16x1xf32>
    %23 = arith.addf %19, %22 : vector<16x1xf32>
    %24 = math.rsqrt %23 : vector<16x1xf32>
    %25 = vector.broadcast %24 : vector<16x1xf32> to vector<16x64xf32>
    %26 = arith.mulf %21, %25 : vector<16x64xf32>
    %27 = vector.broadcast %7 : vector<1x64xf32> to vector<16x64xf32>
    %28 = arith.mulf %26, %27 : vector<16x64xf32>
    %29 = vector.broadcast %8 : vector<1x64xf32> to vector<16x64xf32>
    %30 = arith.addf %28, %29 : vector<16x64xf32>
    %cst_14 = arith.constant 0.000000e+00 : f32
    %31 = vector.broadcast %cst_14 : f32 to vector<16x64xf32>
    %32 = arith.maximumf %30, %31 : vector<16x64xf32>
    %c0_15 = arith.constant 0 : index
    %c0_16 = arith.constant 0 : index
    %33 = vector.load %arg6[%c0_15, %c0_16] : memref<16x64xf32, #tpu.memory_space<vmem>>, vector<16x64xf32>
    tpu.vector_store %arg6[%c0_15, %c0_16], %32 {strides = array<i32>} : memref<16x64xf32, #tpu.memory_space<vmem>>, vector<16x64xf32>,
    return
  }
  func.func @transform_0(%arg0: i32) -> (i32, i32) {
    %c0_i32 = arith.constant 0 : i32
    %c0_i32_0 = arith.constant 0 : i32
    return %arg0, %c0_i32 : i32, i32
  }
  func.func @transform_1(%arg0: i32) -> (i32, i32) {
    %c0_i32 = arith.constant 0 : i32
    %c0_i32_0 = arith.constant 0 : i32
    %c0_i32_1 = arith.constant 0 : i32
    return %c0_i32, %c0_i32_0 : i32, i32
  }
  func.func @transform_2(%arg0: i32) -> (i32, i32) {
    %c0_i32 = arith.constant 0 : i32
    %c0_i32_0 = arith.constant 0 : i32
    %c0_i32_1 = arith.constant 0 : i32
    return %c0_i32, %c0_i32_0 : i32, i32
  }
  func.func @transform_3(%arg0: i32) -> (i32, i32) {
    %c0_i32 = arith.constant 0 : i32
    %c0_i32_0 = arith.constant 0 : i32
    %c0_i32_1 = arith.constant 0 : i32
    return %c0_i32, %c0_i32_0 : i32, i32
  }
  func.func @transform_4(%arg0: i32) -> (i32, i32) {
    %c0_i32 = arith.constant 0 : i32
    %c0_i32_0 = arith.constant 0 : i32
    %c0_i32_1 = arith.constant 0 : i32
    return %c0_i32, %c0_i32_0 : i32, i32
  }
  func.func @transform_5(%arg0: i32) -> (i32, i32) {
    %c0_i32 = arith.constant 0 : i32
    %c0_i32_0 = arith.constant 0 : i32
    return %arg0, %c0_i32 : i32, i32
  }
}

module attributes {stable_mosaic.version = 11 : i64} {
  func.func @_attn_core_kernel(%arg0: i32, %arg1: memref<2x8x192xbf16, #tpu.memory_space<vmem>>, %arg2: memref<2x8x64xbf16, #tpu.memory_space<vmem>>) attributes {dimension_semantics = [#tpu.dimension_semantics<arbitrary>], iteration_bounds = array<i64: 1>, scalar_prefetch = 0 : i64, scratch_operands = 0 : i64, tpu.core_type = #tpu.core_type<tc>, window_params = [{pipeline_mode = #tpu.pipeline_mode<synchronous>, transform_indices = @transform_0, window_bounds = array<i64: 2, 8, 192>}, {pipeline_mode = #tpu.pipeline_mode<synchronous>, transform_indices = @transform_1, window_bounds = array<i64: 2, 8, 64>}]} {
    %c0 = arith.constant 0 : index
    %c0_0 = arith.constant 0 : index
    %c0_1 = arith.constant 0 : index
    %0 = vector.load %arg1[%c0, %c0_0, %c0_1] : memref<2x8x192xbf16, #tpu.memory_space<vmem>>, vector<2x8x64xbf16>
    %c0_2 = arith.constant 0 : index
    %c0_3 = arith.constant 0 : index
    %c64 = arith.constant 64 : index
    %1 = vector.load %arg1[%c0_2, %c0_3, %c64] : memref<2x8x192xbf16, #tpu.memory_space<vmem>>, vector<2x8x64xbf16>
    %c0_4 = arith.constant 0 : index
    %c0_5 = arith.constant 0 : index
    %c128 = arith.constant 128 : index
    %2 = vector.load %arg1[%c0_4, %c0_5, %c128] : memref<2x8x192xbf16, #tpu.memory_space<vmem>>, vector<2x8x64xbf16>
    %cst = arith.constant dense<0.000000e+00> : vector<2x8x8xf32>
    %3 = tpu.matmul %0, %1, %cst {dimension_numbers = #tpu.dot_dimension_numbers<[2], [2], [1], [1], [0, 0, 0, 1, 1, 1], [0], [0]>} : vector<2x8x64xbf16>, vector<2x8x64xbf16>, vector<2x8x8xf32> -> vector<2x8x8xf32>
    %cst_6 = arith.constant dense<0xFF800000> : vector<2x8xf32>
    %4 = vector.multi_reduction <maximumf>, %3, %cst_6 [2] : vector<2x8x8xf32> to vector<2x8xf32>
    %5 = vector.shape_cast %4 : vector<2x8xf32> to vector<2x8x1xf32>
    %6 = vector.broadcast %5 : vector<2x8x1xf32> to vector<2x8x8xf32>
    %7 = arith.subf %3, %6 : vector<2x8x8xf32>
    %8 = math.exp %7 : vector<2x8x8xf32>
    %cst_7 = arith.constant dense<0.000000e+00> : vector<2x8xf32>
    %9 = vector.multi_reduction <add>, %8, %cst_7 [2] : vector<2x8x8xf32> to vector<2x8xf32>
    %10 = vector.shape_cast %9 : vector<2x8xf32> to vector<2x8x1xf32>
    %11 = tpu.reciprocal %10 {approx = true} : vector<2x8x1xf32> -> vector<2x8x1xf32>
    %12 = arith.truncf %8 : vector<2x8x8xf32> to vector<2x8x8xbf16>
    %cst_8 = arith.constant dense<0.000000e+00> : vector<2x8x64xf32>
    %13 = tpu.matmul %12, %2, %cst_8 {dimension_numbers = #tpu.dot_dimension_numbers<[2], [1], [1], [2], [0, 0, 0, 1, 1, 2], [0], [0]>} : vector<2x8x8xbf16>, vector<2x8x64xbf16>, vector<2x8x64xf32> -> vector<2x8x64xf32>
    %14 = vector.broadcast %11 : vector<2x8x1xf32> to vector<2x8x64xf32>
    %15 = arith.mulf %13, %14 : vector<2x8x64xf32>
    %16 = arith.truncf %15 : vector<2x8x64xf32> to vector<2x8x64xbf16>
    %c0_9 = arith.constant 0 : index
    %c0_10 = arith.constant 0 : index
    %c0_11 = arith.constant 0 : index
    %17 = vector.load %arg2[%c0_9, %c0_10, %c0_11] : memref<2x8x64xbf16, #tpu.memory_space<vmem>>, vector<2x8x64xbf16>
    tpu.vector_store %arg2[%c0_9, %c0_10, %c0_11], %16 {strides = array<i32>} : memref<2x8x64xbf16, #tpu.memory_space<vmem>>, vector<2x8x64xbf16>,
    return
  }
  func.func @transform_0(%arg0: i32) -> (i32, i32, i32) {
    %c0_i32 = arith.constant 0 : i32
    %c0_i32_0 = arith.constant 0 : i32
    %c0_i32_1 = arith.constant 0 : i32
    %c0_i32_2 = arith.constant 0 : i32
    return %c0_i32, %c0_i32_0, %c0_i32_1 : i32, i32, i32
  }
  func.func @transform_1(%arg0: i32) -> (i32, i32, i32) {
    %c0_i32 = arith.constant 0 : i32
    %c0_i32_0 = arith.constant 0 : i32
    %c0_i32_1 = arith.constant 0 : i32
    %c0_i32_2 = arith.constant 0 : i32
    return %c0_i32, %c0_i32_0, %c0_i32_1 : i32, i32, i32
  }
}

module attributes {stable_mosaic.version = 11 : i64} {
  func.func @_ln_qkv_kernel(%arg0: i32, %arg1: memref<16x64xf32, #tpu.memory_space<vmem>>, %arg2: memref<1x64xf32, #tpu.memory_space<vmem>>, %arg3: memref<1x64xf32, #tpu.memory_space<vmem>>, %arg4: memref<64x192xbf16, #tpu.memory_space<vmem>>, %arg5: memref<1x192xf32, #tpu.memory_space<vmem>>, %arg6: memref<16x192xbf16, #tpu.memory_space<vmem>>) attributes {dimension_semantics = [#tpu.dimension_semantics<parallel>], iteration_bounds = array<i64: 1>, scalar_prefetch = 0 : i64, scratch_operands = 0 : i64, tpu.core_type = #tpu.core_type<tc>, window_params = [{transform_indices = @transform_0, window_bounds = array<i64: 16, 64>}, {pipeline_mode = #tpu.pipeline_mode<synchronous>, transform_indices = @transform_1, window_bounds = array<i64: 1, 64>}, {pipeline_mode = #tpu.pipeline_mode<synchronous>, transform_indices = @transform_2, window_bounds = array<i64: 1, 64>}, {pipeline_mode = #tpu.pipeline_mode<synchronous>, transform_indices = @transform_3, window_bounds = array<i64: 64, 192>}, {pipeline_mode = #tpu.pipeline_mode<synchronous>, transform_indices = @transform_4, window_bounds = array<i64: 1, 192>}, {transform_indices = @transform_5, window_bounds = array<i64: 16, 192>}]} {
    %c0 = arith.constant 0 : index
    %c0_0 = arith.constant 0 : index
    %0 = vector.load %arg1[%c0, %c0_0] : memref<16x64xf32, #tpu.memory_space<vmem>>, vector<16x64xf32>
    %c0_1 = arith.constant 0 : index
    %c0_2 = arith.constant 0 : index
    %1 = vector.load %arg2[%c0_1, %c0_2] : memref<1x64xf32, #tpu.memory_space<vmem>>, vector<1x64xf32>
    %c0_3 = arith.constant 0 : index
    %c0_4 = arith.constant 0 : index
    %2 = vector.load %arg3[%c0_3, %c0_4] : memref<1x64xf32, #tpu.memory_space<vmem>>, vector<1x64xf32>
    %cst = arith.constant dense<0.000000e+00> : vector<16xf32>
    %3 = vector.multi_reduction <add>, %0, %cst [1] : vector<16x64xf32> to vector<16xf32>
    %4 = vector.shape_cast %3 : vector<16xf32> to vector<16x1xf32>
    %cst_5 = arith.constant 6.400000e+01 : f32
    %5 = vector.broadcast %cst_5 : f32 to vector<16x1xf32>
    %6 = arith.divf %4, %5 : vector<16x1xf32>
    %7 = vector.broadcast %6 : vector<16x1xf32> to vector<16x64xf32>
    %8 = arith.subf %0, %7 : vector<16x64xf32>
    %9 = arith.mulf %8, %8 : vector<16x64xf32>
    %cst_6 = arith.constant dense<0.000000e+00> : vector<16xf32>
    %10 = vector.multi_reduction <add>, %9, %cst_6 [1] : vector<16x64xf32> to vector<16xf32>
    %11 = vector.shape_cast %10 : vector<16xf32> to vector<16x1xf32>
    %cst_7 = arith.constant 6.400000e+01 : f32
    %12 = vector.broadcast %cst_7 : f32 to vector<16x1xf32>
    %13 = arith.divf %11, %12 : vector<16x1xf32>
    %14 = vector.broadcast %6 : vector<16x1xf32> to vector<16x64xf32>
    %15 = arith.subf %0, %14 : vector<16x64xf32>
    %cst_8 = arith.constant 9.99999996E-13 : f32
    %16 = vector.broadcast %cst_8 : f32 to vector<16x1xf32>
    %17 = arith.addf %13, %16 : vector<16x1xf32>
    %18 = math.rsqrt %17 : vector<16x1xf32>
    %19 = vector.broadcast %18 : vector<16x1xf32> to vector<16x64xf32>
    %20 = arith.mulf %15, %19 : vector<16x64xf32>
    %21 = vector.broadcast %1 : vector<1x64xf32> to vector<16x64xf32>
    %22 = arith.mulf %20, %21 : vector<16x64xf32>
    %23 = vector.broadcast %2 : vector<1x64xf32> to vector<16x64xf32>
    %24 = arith.addf %22, %23 : vector<16x64xf32>
    %25 = arith.truncf %24 : vector<16x64xf32> to vector<16x64xbf16>
    %c0_9 = arith.constant 0 : index
    %c0_10 = arith.constant 0 : index
    %26 = vector.load %arg4[%c0_9, %c0_10] : memref<64x192xbf16, #tpu.memory_space<vmem>>, vector<64x192xbf16>
    %cst_11 = arith.constant dense<0.000000e+00> : vector<16x192xf32>
    %27 = tpu.matmul %25, %26, %cst_11 {dimension_numbers = #tpu.dot_dimension_numbers<[1], [0], [0], [1], [0, 0, 1, 1], [], []>} : vector<16x64xbf16>, vector<64x192xbf16>, vector<16x192xf32> -> vector<16x192xf32>
    %c0_12 = arith.constant 0 : index
    %c0_13 = arith.constant 0 : index
    %28 = vector.load %arg5[%c0_12, %c0_13] : memref<1x192xf32, #tpu.memory_space<vmem>>, vector<1x192xf32>
    %29 = vector.broadcast %28 : vector<1x192xf32> to vector<16x192xf32>
    %30 = arith.addf %27, %29 : vector<16x192xf32>
    %31 = arith.truncf %30 : vector<16x192xf32> to vector<16x192xbf16>
    %c0_14 = arith.constant 0 : index
    %c0_15 = arith.constant 0 : index
    %32 = vector.load %arg6[%c0_14, %c0_15] : memref<16x192xbf16, #tpu.memory_space<vmem>>, vector<16x192xbf16>
    tpu.vector_store %arg6[%c0_14, %c0_15], %31 {strides = array<i32>} : memref<16x192xbf16, #tpu.memory_space<vmem>>, vector<16x192xbf16>,
    return
  }
  func.func @transform_0(%arg0: i32) -> (i32, i32) {
    %c0_i32 = arith.constant 0 : i32
    %c0_i32_0 = arith.constant 0 : i32
    return %arg0, %c0_i32 : i32, i32
  }
  func.func @transform_1(%arg0: i32) -> (i32, i32) {
    %c0_i32 = arith.constant 0 : i32
    %c0_i32_0 = arith.constant 0 : i32
    %c0_i32_1 = arith.constant 0 : i32
    return %c0_i32, %c0_i32_0 : i32, i32
  }
  func.func @transform_2(%arg0: i32) -> (i32, i32) {
    %c0_i32 = arith.constant 0 : i32
    %c0_i32_0 = arith.constant 0 : i32
    %c0_i32_1 = arith.constant 0 : i32
    return %c0_i32, %c0_i32_0 : i32, i32
  }
  func.func @transform_3(%arg0: i32) -> (i32, i32) {
    %c0_i32 = arith.constant 0 : i32
    %c0_i32_0 = arith.constant 0 : i32
    %c0_i32_1 = arith.constant 0 : i32
    return %c0_i32, %c0_i32_0 : i32, i32
  }
  func.func @transform_4(%arg0: i32) -> (i32, i32) {
    %c0_i32 = arith.constant 0 : i32
    %c0_i32_0 = arith.constant 0 : i32
    %c0_i32_1 = arith.constant 0 : i32
    return %c0_i32, %c0_i32_0 : i32, i32
  }
  func.func @transform_5(%arg0: i32) -> (i32, i32) {
    %c0_i32 = arith.constant 0 : i32
    %c0_i32_0 = arith.constant 0 : i32
    return %arg0, %c0_i32 : i32, i32
  }
}

module attributes {stable_mosaic.version = 11 : i64} {
  func.func @_proj_ffn_kernel(%arg0: i32, %arg1: memref<16x64xbf16, #tpu.memory_space<vmem>>, %arg2: memref<16x64xf32, #tpu.memory_space<vmem>>, %arg3: memref<64x64xbf16, #tpu.memory_space<vmem>>, %arg4: memref<1x64xf32, #tpu.memory_space<vmem>>, %arg5: memref<1x64xf32, #tpu.memory_space<vmem>>, %arg6: memref<1x64xf32, #tpu.memory_space<vmem>>, %arg7: memref<64x128xbf16, #tpu.memory_space<vmem>>, %arg8: memref<1x128xf32, #tpu.memory_space<vmem>>, %arg9: memref<128x64xbf16, #tpu.memory_space<vmem>>, %arg10: memref<1x64xf32, #tpu.memory_space<vmem>>, %arg11: memref<16x64xf32, #tpu.memory_space<vmem>>) attributes {dimension_semantics = [#tpu.dimension_semantics<parallel>], iteration_bounds = array<i64: 1>, scalar_prefetch = 0 : i64, scratch_operands = 0 : i64, tpu.core_type = #tpu.core_type<tc>, window_params = [{transform_indices = @transform_0, window_bounds = array<i64: 16, 64>}, {transform_indices = @transform_1, window_bounds = array<i64: 16, 64>}, {pipeline_mode = #tpu.pipeline_mode<synchronous>, transform_indices = @transform_2, window_bounds = array<i64: 64, 64>}, {pipeline_mode = #tpu.pipeline_mode<synchronous>, transform_indices = @transform_3, window_bounds = array<i64: 1, 64>}, {pipeline_mode = #tpu.pipeline_mode<synchronous>, transform_indices = @transform_4, window_bounds = array<i64: 1, 64>}, {pipeline_mode = #tpu.pipeline_mode<synchronous>, transform_indices = @transform_5, window_bounds = array<i64: 1, 64>}, {pipeline_mode = #tpu.pipeline_mode<synchronous>, transform_indices = @transform_6, window_bounds = array<i64: 64, 128>}, {pipeline_mode = #tpu.pipeline_mode<synchronous>, transform_indices = @transform_7, window_bounds = array<i64: 1, 128>}, {pipeline_mode = #tpu.pipeline_mode<synchronous>, transform_indices = @transform_8, window_bounds = array<i64: 128, 64>}, {pipeline_mode = #tpu.pipeline_mode<synchronous>, transform_indices = @transform_9, window_bounds = array<i64: 1, 64>}, {transform_indices = @transform_10, window_bounds = array<i64: 16, 64>}]} {
    %c0 = arith.constant 0 : index
    %c0_0 = arith.constant 0 : index
    %0 = vector.load %arg1[%c0, %c0_0] : memref<16x64xbf16, #tpu.memory_space<vmem>>, vector<16x64xbf16>
    %c0_1 = arith.constant 0 : index
    %c0_2 = arith.constant 0 : index
    %1 = vector.load %arg3[%c0_1, %c0_2] : memref<64x64xbf16, #tpu.memory_space<vmem>>, vector<64x64xbf16>
    %cst = arith.constant dense<0.000000e+00> : vector<16x64xf32>
    %2 = tpu.matmul %0, %1, %cst {dimension_numbers = #tpu.dot_dimension_numbers<[1], [0], [0], [1], [0, 0, 1, 1], [], []>} : vector<16x64xbf16>, vector<64x64xbf16>, vector<16x64xf32> -> vector<16x64xf32>
    %c0_3 = arith.constant 0 : index
    %c0_4 = arith.constant 0 : index
    %3 = vector.load %arg4[%c0_3, %c0_4] : memref<1x64xf32, #tpu.memory_space<vmem>>, vector<1x64xf32>
    %4 = vector.broadcast %3 : vector<1x64xf32> to vector<16x64xf32>
    %5 = arith.addf %2, %4 : vector<16x64xf32>
    %c0_5 = arith.constant 0 : index
    %c0_6 = arith.constant 0 : index
    %6 = vector.load %arg2[%c0_5, %c0_6] : memref<16x64xf32, #tpu.memory_space<vmem>>, vector<16x64xf32>
    %7 = arith.addf %6, %5 : vector<16x64xf32>
    %c0_7 = arith.constant 0 : index
    %c0_8 = arith.constant 0 : index
    %8 = vector.load %arg5[%c0_7, %c0_8] : memref<1x64xf32, #tpu.memory_space<vmem>>, vector<1x64xf32>
    %c0_9 = arith.constant 0 : index
    %c0_10 = arith.constant 0 : index
    %9 = vector.load %arg6[%c0_9, %c0_10] : memref<1x64xf32, #tpu.memory_space<vmem>>, vector<1x64xf32>
    %cst_11 = arith.constant dense<0.000000e+00> : vector<16xf32>
    %10 = vector.multi_reduction <add>, %7, %cst_11 [1] : vector<16x64xf32> to vector<16xf32>
    %11 = vector.shape_cast %10 : vector<16xf32> to vector<16x1xf32>
    %cst_12 = arith.constant 6.400000e+01 : f32
    %12 = vector.broadcast %cst_12 : f32 to vector<16x1xf32>
    %13 = arith.divf %11, %12 : vector<16x1xf32>
    %14 = vector.broadcast %13 : vector<16x1xf32> to vector<16x64xf32>
    %15 = arith.subf %7, %14 : vector<16x64xf32>
    %16 = arith.mulf %15, %15 : vector<16x64xf32>
    %cst_13 = arith.constant dense<0.000000e+00> : vector<16xf32>
    %17 = vector.multi_reduction <add>, %16, %cst_13 [1] : vector<16x64xf32> to vector<16xf32>
    %18 = vector.shape_cast %17 : vector<16xf32> to vector<16x1xf32>
    %cst_14 = arith.constant 6.400000e+01 : f32
    %19 = vector.broadcast %cst_14 : f32 to vector<16x1xf32>
    %20 = arith.divf %18, %19 : vector<16x1xf32>
    %21 = vector.broadcast %13 : vector<16x1xf32> to vector<16x64xf32>
    %22 = arith.subf %7, %21 : vector<16x64xf32>
    %cst_15 = arith.constant 9.99999996E-13 : f32
    %23 = vector.broadcast %cst_15 : f32 to vector<16x1xf32>
    %24 = arith.addf %20, %23 : vector<16x1xf32>
    %25 = math.rsqrt %24 : vector<16x1xf32>
    %26 = vector.broadcast %25 : vector<16x1xf32> to vector<16x64xf32>
    %27 = arith.mulf %22, %26 : vector<16x64xf32>
    %28 = vector.broadcast %8 : vector<1x64xf32> to vector<16x64xf32>
    %29 = arith.mulf %27, %28 : vector<16x64xf32>
    %30 = vector.broadcast %9 : vector<1x64xf32> to vector<16x64xf32>
    %31 = arith.addf %29, %30 : vector<16x64xf32>
    %32 = arith.truncf %31 : vector<16x64xf32> to vector<16x64xbf16>
    %c0_16 = arith.constant 0 : index
    %c0_17 = arith.constant 0 : index
    %33 = vector.load %arg7[%c0_16, %c0_17] : memref<64x128xbf16, #tpu.memory_space<vmem>>, vector<64x128xbf16>
    %cst_18 = arith.constant dense<0.000000e+00> : vector<16x128xf32>
    %34 = tpu.matmul %32, %33, %cst_18 {dimension_numbers = #tpu.dot_dimension_numbers<[1], [0], [0], [1], [0, 0, 1, 1], [], []>} : vector<16x64xbf16>, vector<64x128xbf16>, vector<16x128xf32> -> vector<16x128xf32>
    %c0_19 = arith.constant 0 : index
    %c0_20 = arith.constant 0 : index
    %35 = vector.load %arg8[%c0_19, %c0_20] : memref<1x128xf32, #tpu.memory_space<vmem>>, vector<1x128xf32>
    %36 = vector.broadcast %35 : vector<1x128xf32> to vector<16x128xf32>
    %37 = arith.addf %34, %36 : vector<16x128xf32>
    %cst_21 = arith.constant 0.000000e+00 : f32
    %38 = vector.broadcast %cst_21 : f32 to vector<16x128xf32>
    %39 = arith.maximumf %37, %38 : vector<16x128xf32>
    %40 = arith.truncf %39 : vector<16x128xf32> to vector<16x128xbf16>
    %c0_22 = arith.constant 0 : index
    %c0_23 = arith.constant 0 : index
    %41 = vector.load %arg9[%c0_22, %c0_23] : memref<128x64xbf16, #tpu.memory_space<vmem>>, vector<128x64xbf16>
    %cst_24 = arith.constant dense<0.000000e+00> : vector<16x64xf32>
    %42 = tpu.matmul %40, %41, %cst_24 {dimension_numbers = #tpu.dot_dimension_numbers<[1], [0], [0], [1], [0, 0, 1, 1], [], []>} : vector<16x128xbf16>, vector<128x64xbf16>, vector<16x64xf32> -> vector<16x64xf32>
    %c0_25 = arith.constant 0 : index
    %c0_26 = arith.constant 0 : index
    %43 = vector.load %arg10[%c0_25, %c0_26] : memref<1x64xf32, #tpu.memory_space<vmem>>, vector<1x64xf32>
    %44 = vector.broadcast %43 : vector<1x64xf32> to vector<16x64xf32>
    %45 = arith.addf %42, %44 : vector<16x64xf32>
    %46 = arith.addf %7, %45 : vector<16x64xf32>
    %c0_27 = arith.constant 0 : index
    %c0_28 = arith.constant 0 : index
    %47 = vector.load %arg11[%c0_27, %c0_28] : memref<16x64xf32, #tpu.memory_space<vmem>>, vector<16x64xf32>
    tpu.vector_store %arg11[%c0_27, %c0_28], %46 {strides = array<i32>} : memref<16x64xf32, #tpu.memory_space<vmem>>, vector<16x64xf32>,
    return
  }
  func.func @transform_0(%arg0: i32) -> (i32, i32) {
    %c0_i32 = arith.constant 0 : i32
    %c0_i32_0 = arith.constant 0 : i32
    return %arg0, %c0_i32 : i32, i32
  }
  func.func @transform_1(%arg0: i32) -> (i32, i32) {
    %c0_i32 = arith.constant 0 : i32
    %c0_i32_0 = arith.constant 0 : i32
    return %arg0, %c0_i32 : i32, i32
  }
  func.func @transform_2(%arg0: i32) -> (i32, i32) {
    %c0_i32 = arith.constant 0 : i32
    %c0_i32_0 = arith.constant 0 : i32
    %c0_i32_1 = arith.constant 0 : i32
    return %c0_i32, %c0_i32_0 : i32, i32
  }
  func.func @transform_3(%arg0: i32) -> (i32, i32) {
    %c0_i32 = arith.constant 0 : i32
    %c0_i32_0 = arith.constant 0 : i32
    %c0_i32_1 = arith.constant 0 : i32
    return %c0_i32, %c0_i32_0 : i32, i32
  }
  func.func @transform_4(%arg0: i32) -> (i32, i32) {
    %c0_i32 = arith.constant 0 : i32
    %c0_i32_0 = arith.constant 0 : i32
    %c0_i32_1 = arith.constant 0 : i32
    return %c0_i32, %c0_i32_0 : i32, i32
  }
  func.func @transform_5(%arg0: i32) -> (i32, i32) {
    %c0_i32 = arith.constant 0 : i32
    %c0_i32_0 = arith.constant 0 : i32
    %c0_i32_1 = arith.constant 0 : i32
    return %c0_i32, %c0_i32_0 : i32, i32
  }
  func.func @transform_6(%arg0: i32) -> (i32, i32) {
    %c0_i32 = arith.constant 0 : i32
    %c0_i32_0 = arith.constant 0 : i32
    %c0_i32_1 = arith.constant 0 : i32
    return %c0_i32, %c0_i32_0 : i32, i32
  }
  func.func @transform_7(%arg0: i32) -> (i32, i32) {
    %c0_i32 = arith.constant 0 : i32
    %c0_i32_0 = arith.constant 0 : i32
    %c0_i32_1 = arith.constant 0 : i32
    return %c0_i32, %c0_i32_0 : i32, i32
  }
  func.func @transform_8(%arg0: i32) -> (i32, i32) {
    %c0_i32 = arith.constant 0 : i32
    %c0_i32_0 = arith.constant 0 : i32
    %c0_i32_1 = arith.constant 0 : i32
    return %c0_i32, %c0_i32_0 : i32, i32
  }
  func.func @transform_9(%arg0: i32) -> (i32, i32) {
    %c0_i32 = arith.constant 0 : i32
    %c0_i32_0 = arith.constant 0 : i32
    %c0_i32_1 = arith.constant 0 : i32
    return %c0_i32, %c0_i32_0 : i32, i32
  }
  func.func @transform_10(%arg0: i32) -> (i32, i32) {
    %c0_i32 = arith.constant 0 : i32
    %c0_i32_0 = arith.constant 0 : i32
    return %arg0, %c0_i32 : i32, i32
  }
}

module attributes {stable_mosaic.version = 11 : i64} {
  func.func @_head_kernel(%arg0: i32, %arg1: memref<16x64xf32, #tpu.memory_space<vmem>>, %arg2: memref<1x64xf32, #tpu.memory_space<vmem>>, %arg3: memref<1x64xf32, #tpu.memory_space<vmem>>, %arg4: memref<64x128xbf16, #tpu.memory_space<vmem>>, %arg5: memref<1x128xf32, #tpu.memory_space<vmem>>, %arg6: memref<16x128xf32, #tpu.memory_space<vmem>>) attributes {dimension_semantics = [#tpu.dimension_semantics<parallel>], iteration_bounds = array<i64: 1>, scalar_prefetch = 0 : i64, scratch_operands = 0 : i64, tpu.core_type = #tpu.core_type<tc>, window_params = [{transform_indices = @transform_0, window_bounds = array<i64: 16, 64>}, {pipeline_mode = #tpu.pipeline_mode<synchronous>, transform_indices = @transform_1, window_bounds = array<i64: 1, 64>}, {pipeline_mode = #tpu.pipeline_mode<synchronous>, transform_indices = @transform_2, window_bounds = array<i64: 1, 64>}, {pipeline_mode = #tpu.pipeline_mode<synchronous>, transform_indices = @transform_3, window_bounds = array<i64: 64, 128>}, {pipeline_mode = #tpu.pipeline_mode<synchronous>, transform_indices = @transform_4, window_bounds = array<i64: 1, 128>}, {transform_indices = @transform_5, window_bounds = array<i64: 16, 128>}]} {
    %c0 = arith.constant 0 : index
    %c0_0 = arith.constant 0 : index
    %0 = vector.load %arg1[%c0, %c0_0] : memref<16x64xf32, #tpu.memory_space<vmem>>, vector<16x64xf32>
    %c0_1 = arith.constant 0 : index
    %c0_2 = arith.constant 0 : index
    %1 = vector.load %arg2[%c0_1, %c0_2] : memref<1x64xf32, #tpu.memory_space<vmem>>, vector<1x64xf32>
    %c0_3 = arith.constant 0 : index
    %c0_4 = arith.constant 0 : index
    %2 = vector.load %arg3[%c0_3, %c0_4] : memref<1x64xf32, #tpu.memory_space<vmem>>, vector<1x64xf32>
    %cst = arith.constant dense<0.000000e+00> : vector<16xf32>
    %3 = vector.multi_reduction <add>, %0, %cst [1] : vector<16x64xf32> to vector<16xf32>
    %4 = vector.shape_cast %3 : vector<16xf32> to vector<16x1xf32>
    %cst_5 = arith.constant 6.400000e+01 : f32
    %5 = vector.broadcast %cst_5 : f32 to vector<16x1xf32>
    %6 = arith.divf %4, %5 : vector<16x1xf32>
    %7 = vector.broadcast %6 : vector<16x1xf32> to vector<16x64xf32>
    %8 = arith.subf %0, %7 : vector<16x64xf32>
    %9 = arith.mulf %8, %8 : vector<16x64xf32>
    %cst_6 = arith.constant dense<0.000000e+00> : vector<16xf32>
    %10 = vector.multi_reduction <add>, %9, %cst_6 [1] : vector<16x64xf32> to vector<16xf32>
    %11 = vector.shape_cast %10 : vector<16xf32> to vector<16x1xf32>
    %cst_7 = arith.constant 6.400000e+01 : f32
    %12 = vector.broadcast %cst_7 : f32 to vector<16x1xf32>
    %13 = arith.divf %11, %12 : vector<16x1xf32>
    %14 = vector.broadcast %6 : vector<16x1xf32> to vector<16x64xf32>
    %15 = arith.subf %0, %14 : vector<16x64xf32>
    %cst_8 = arith.constant 9.99999996E-13 : f32
    %16 = vector.broadcast %cst_8 : f32 to vector<16x1xf32>
    %17 = arith.addf %13, %16 : vector<16x1xf32>
    %18 = math.rsqrt %17 : vector<16x1xf32>
    %19 = vector.broadcast %18 : vector<16x1xf32> to vector<16x64xf32>
    %20 = arith.mulf %15, %19 : vector<16x64xf32>
    %21 = vector.broadcast %1 : vector<1x64xf32> to vector<16x64xf32>
    %22 = arith.mulf %20, %21 : vector<16x64xf32>
    %23 = vector.broadcast %2 : vector<1x64xf32> to vector<16x64xf32>
    %24 = arith.addf %22, %23 : vector<16x64xf32>
    %25 = arith.truncf %24 : vector<16x64xf32> to vector<16x64xbf16>
    %c0_9 = arith.constant 0 : index
    %c0_10 = arith.constant 0 : index
    %26 = vector.load %arg4[%c0_9, %c0_10] : memref<64x128xbf16, #tpu.memory_space<vmem>>, vector<64x128xbf16>
    %cst_11 = arith.constant dense<0.000000e+00> : vector<16x128xf32>
    %27 = tpu.matmul %25, %26, %cst_11 {dimension_numbers = #tpu.dot_dimension_numbers<[1], [0], [0], [1], [0, 0, 1, 1], [], []>} : vector<16x64xbf16>, vector<64x128xbf16>, vector<16x128xf32> -> vector<16x128xf32>
    %c0_12 = arith.constant 0 : index
    %c0_13 = arith.constant 0 : index
    %28 = vector.load %arg5[%c0_12, %c0_13] : memref<1x128xf32, #tpu.memory_space<vmem>>, vector<1x128xf32>
    %29 = vector.broadcast %28 : vector<1x128xf32> to vector<16x128xf32>
    %30 = arith.addf %27, %29 : vector<16x128xf32>
    %c0_14 = arith.constant 0 : index
    %c0_15 = arith.constant 0 : index
    %31 = vector.load %arg6[%c0_14, %c0_15] : memref<16x128xf32, #tpu.memory_space<vmem>>, vector<16x128xf32>
    tpu.vector_store %arg6[%c0_14, %c0_15], %30 {strides = array<i32>} : memref<16x128xf32, #tpu.memory_space<vmem>>, vector<16x128xf32>,
    return
  }
  func.func @transform_0(%arg0: i32) -> (i32, i32) {
    %c0_i32 = arith.constant 0 : i32
    %c0_i32_0 = arith.constant 0 : i32
    return %arg0, %c0_i32 : i32, i32
  }
  func.func @transform_1(%arg0: i32) -> (i32, i32) {
    %c0_i32 = arith.constant 0 : i32
    %c0_i32_0 = arith.constant 0 : i32
    %c0_i32_1 = arith.constant 0 : i32
    return %c0_i32, %c0_i32_0 : i32, i32
  }
  func.func @transform_2(%arg0: i32) -> (i32, i32) {
    %c0_i32 = arith.constant 0 : i32
    %c0_i32_0 = arith.constant 0 : i32
    %c0_i32_1 = arith.constant 0 : i32
    return %c0_i32, %c0_i32_0 : i32, i32
  }
  func.func @transform_3(%arg0: i32) -> (i32, i32) {
    %c0_i32 = arith.constant 0 : i32
    %c0_i32_0 = arith.constant 0 : i32
    %c0_i32_1 = arith.constant 0 : i32
    return %c0_i32, %c0_i32_0 : i32, i32
  }
  func.func @transform_4(%arg0: i32) -> (i32, i32) {
    %c0_i32 = arith.constant 0 : i32
    %c0_i32_0 = arith.constant 0 : i32
    %c0_i32_1 = arith.constant 0 : i32
    return %c0_i32, %c0_i32_0 : i32, i32
  }
  func.func @transform_5(%arg0: i32) -> (i32, i32) {
    %c0_i32 = arith.constant 0 : i32
    %c0_i32_0 = arith.constant 0 : i32
    return %arg0, %c0_i32 : i32, i32
  }
}

</mosaic_0001>

<bundles_post_ra>
// kernel: transformer_diarization_forward.8
= control target key start
LH: loop header
LB: loop body
LE: loop exit
PB: predicated region body
PF: predicated region fallthrough
CT: control target
= control target key end

     0   :  { %10 = vsyncpa [#allocation3], 0  ;;  %s338_s0 = inlined_call_operand.hbm [shape: f32[16,32], index: 0, kind: input, shape index: {}]   ;;  %s339_s1 = inlined_call_operand.hbm [shape: bf16[32,64], index: 1, kind: input, shape index: {}]   ;;  %s340_s2 = inlined_call_operand.vmem [shape: f32[1,64], index: 2, kind: input, shape index: {}]   ;;  %s341_s3 = inlined_call_operand.vmem [shape: f32[1,64], index: 3, kind: input, shape index: {}]   ;;  %s342_s4 = inlined_call_operand.vmem [shape: f32[1,64], index: 4, kind: input, shape index: {}]   ;;  %s343_s5 = inlined_call_operand.vmem [shape: f32[16,64], index: 5, kind: output, shape index: {}]  }
   0x1   :  { %11 = vsyncpa [#allocation5], 0  ;;  %s255_s18 = smov [#allocation2]   ;;  %s207_s22 = scalar_lea.hbm %s338_s0, 256 }
   0x2   :  { %s17_s19 = sshll.u32 %s255_s18, 4  ;;  %p208_p0 = scmp.ne.s32.totalorder %s338_s0, %s207_s22  ;;  %s18_s19 = int_to_ptr.vmem [resolvable:$true] %s17_s19 }
   0x3   :  { %p211_p1 = scmp.lt.u32.totalorder %s207_s22, %s338_s0 }
   0x5   :  { %p213_p2 = pnand %p211_p1, %p208_p0 }
   0x7   :  { %216 = shalt.err (!%p213_p2)
}
   0x8   :  { %s217_s27 = scalar_lea.vmem %s18_s19, 256  ;;  %p222_p4 = scmp.lt.s32.totalorder %s18_s19, %s18_s19 }
   0x9   :  { %p218_p3 = scmp.ne.s32.totalorder %s18_s19, %s217_s27  ;;  %p223_p5 = scmp.lt.s32.totalorder %s217_s27, %s217_s27 }
   0xb   :  { %p224_p6 = por %p223_p5, %p222_p4 }
   0xd   :  { %p225_p7 = pnand %p224_p6, %p218_p3 }
   0xf   :  { %228 = shalt.err (!%p225_p7)
}
  0x10   :  { %s256_s28 = smov 128   ;;  %s257_s29 = smov 8  }
  0x11   :  { %23 = dma.hbm_to_vmem [thread:$0]  %s338_s0, 256, %s18_s19, [#allocation3], %s256_s28, %s256_s28, %s257_s29  }
  0x12   :  { %s258_s7 = smov [#allocation4]   ;;  %s229_s11 = scalar_lea.hbm %s339_s1, 256 }
  0x13   :  { %s29_s8 = sshll.u32 %s258_s7, 4  ;;  %p230_p8 = scmp.ne.s32.totalorder %s339_s1, %s229_s11  ;;  %s30_s8 = int_to_ptr.vmem [resolvable:$true] %s29_s8 }
  0x14   :  { %p233_p9 = scmp.lt.u32.totalorder %s229_s11, %s339_s1 }
  0x16   :  { %p235_p10 = pnand %p233_p9, %p230_p8 }
  0x18   :  { %238 = shalt.err (!%p235_p10)
}
  0x19   :  { %s239_s16 = scalar_lea.vmem %s30_s8, 256  ;;  %p244_p12 = scmp.lt.s32.totalorder %s30_s8, %s30_s8 }
  0x1a   :  { %p240_p11 = scmp.ne.s32.totalorder %s30_s8, %s239_s16  ;;  %p245_p13 = scmp.lt.s32.totalorder %s239_s16, %s239_s16 }
  0x1c   :  { %p246_p0 = por %p245_p13, %p244_p12 }
  0x1e   :  { %p247_p1 = pnand %p246_p0, %p240_p11 }
  0x20   :  { %250 = shalt.err (!%p247_p1)
}
  0x21   :  { %s259_s0 = smov 64   ;;  %s260_s17 = smov 4  }
  0x22   :  { %35 = dma.hbm_to_vmem [thread:$0]  %s339_s1, 256, %s30_s8, [#allocation5], %s259_s0, %s259_s0, %s260_s17  }
  0x23   :  { %251 = dma.done.wait [#allocation3], 256  }
  0x24   :  { %252 = vsyncadd [#allocation3], 4294967040 }
  0x25   :  { %253 = dma.done.wait [#allocation5], 256  }
  0x26   :  { %254 = vsyncadd [#allocation5], 4294967040  ;;  %v261_v0 = vmov 0.0   ;;  %vm262_vm0 = vmmov 0   ;;  %v201_v1 = vld [vmem:[#allocation4] sm:$0xff]   ;;  %v202_v2 = vld [vmem:[#allocation4 + $0x8] sm:$0xff]  }
  0x27   :  { %185 = vmatprep.subr.bf16.mxu0 %v261_v0  ;;  %189 = vmatprep.mubr.msk.bf16.mxu0 %vm262_vm0, %v261_v0  ;;  %v49_v3 = vld [vmem:[#allocation2] sm:$0xff]  ;;  %v50_v4 = vld [vmem:[#allocation2 + $0x8] sm:$0xff]  ;;  %vm75_vm1 = vcmask 261120   ;;  %vm122_vm2 = vcmask 523264  }
  0x28   :  { %186 = vmatpush3.bf16.msra.mxu0 %v201_v1  ;;  %v51_v5 = vpack.c.bf16 %v50_v4, %v49_v3  ;;  %v176_v6 = vld [vmem:[%s340_s2] ss:$0 sm:$0xff] }
  0x29   :  { %187 = vmatprep.subr.bf16.mxu0 %v261_v0  ;;  %v180_v32 = vld [vmem:[%s341_s3] ss:$0 sm:$0xff] }
  0x2a   :  { %v181_v34 = vld [vmem:[%s342_s4] ss:$0 sm:$0xff] }
  0x2c   :  { %188 = vmatpush3.bf16.msra.mxu0 %v202_v2 }
  0x2f   :  { %190 = vmatmul.mubr.msk.bf16.vlgmr.msra.gmra.mrb[0].mxu0 %vm75_vm1, %v51_v5 }
 0x102   :  { %v113_v7 = vpop.f32.mrb[0].mxu0 }
 0x103   :  { %v114_v8 = vadd.f32 %v176_v6, %v113_v7  ;;  %v191_v9 = vpop.f32.mrb[1].mxu0 }
 0x104   :  { %v116_v10 = vpop.f32.mrb[2].mxu0 }
 0x105   :  { %v117_v11 = vadd.f32 %v176_v6, %v116_v10  ;;  %v192_v12 = vpop.f32.mrb[3].mxu0  ;;  %v123_v13 = vsel %vm122_vm2, %v114_v8, 0.0 }
 0x106   :  { %124 = vadd.xlane.f32.xlu0 %v123_v13 }
 0x107   :  { %v126_v14 = vsel %vm122_vm2, %v117_v11, 0.0 }
 0x10a   :  { %127 = vadd.xlane.f32.xlu0 %v126_v14 }
 0x193   :  { %v125_v15 = vpop.xlane.xlu0 %124 }
 0x194   :  { %v130_v16 = vmul.f32 0.015625, %v125_v15 }
 0x196   :  { %v132_v17 = vsub.f32 %v114_v8, %v130_v16 }
 0x197   :  { %v128_v18 = vpop.xlane.xlu0 %127 }
 0x198   :  { %v131_v19 = vmul.f32 0.015625, %v128_v18  ;;  %v134_v20 = vmul.f32 %v132_v17, %v132_v17 }
 0x19a   :  { %v133_v21 = vsub.f32 %v117_v11, %v131_v19  ;;  %v136_v22 = vsel %vm122_vm2, %v134_v20, 0.0 }
 0x19b   :  { %137 = vadd.xlane.f32.xlu1 %v136_v22 }
 0x19c   :  { %v135_v23 = vmul.f32 %v133_v21, %v133_v21 }
 0x19e   :  { %v139_v24 = vsel %vm122_vm2, %v135_v23, 0.0 }
 0x19f   :  { %140 = vadd.xlane.f32.xlu1 %v139_v24 }
 0x228   :  { %v138_v25 = vpop.xlane.xlu1 %137 }
 0x229   :  { %v142_v26 = vmul.f32 0.015625, %v138_v25 }
 0x22b   :  { %v144_v27 = vadd.f32 1e-12, %v142_v26 }
 0x22c   :  { %v141_v28 = vpop.xlane.xlu1 %140 }
 0x22d   :  { %203 = vrsqrt.f32 %v144_v27  ;;  %v143_v29 = vmul.f32 0.015625, %v141_v28 }
 0x22f   :  { %v145_v30 = vadd.f32 1e-12, %v143_v29 }
 0x231   :  { %205 = vrsqrt.f32 %v145_v30 }
 0x237   :  { %v204_v31 = vpop.eup %203 }
 0x238   :  { %v148_v33 = vmul.f32 %v204_v31, %v132_v17 }
 0x23a   :  { %v156_v35 = vmul.f32 %v180_v32, %v148_v33 }
 0x23b   :  { %v206_v36 = vpop.eup %205 }
 0x23c   :  { %v164_v37 = vadd.f32 %v181_v34, %v156_v35  ;;  %v149_v38 = vmul.f32 %v206_v36, %v133_v21 }
 0x23e   :  { %v166_v39 = vmax.f32 %v164_v37, 0.0  ;;  %v157_v40 = vmul.f32 %v180_v32, %v149_v38 }
 0x240   :  { %168 = vst.msk [vmem:[%s343_s5] sm:$0xff] %vm122_vm2, %v166_v39  ;;  %v165_v41 = vadd.f32 %v181_v34, %v157_v40 }
 0x242   :  { %v167_v42 = vmax.f32 %v165_v41, 0.0 }
 0x244   :  { %169 = vst.msk [vmem:[%s343_s5 + $0x8] sm:$0xff] %vm122_vm2, %v167_v42 }
 0x245   :  { %174 = vsyncpa [#allocation3], 1 }
 0x246   :  { %175 = vsyncpa [#allocation5], 1 }

// kernel: transformer_diarization_forward.10
= control target key start
LH: loop header
LB: loop body
LE: loop exit
PB: predicated region body
PF: predicated region fallthrough
CT: control target
= control target key end

     0   :  { %v294_v2 = vmov 0.0   ;;  %vm295_vm0 = vmmov 0   ;;  %s296_s10 = smov 64   ;;  %vm18_vm1 = vcmask 523264   ;;  %vm116_vm2 = vcmask 64512   ;;  %s335_s0 = inlined_call_operand.vmem [shape: bf16[2,8,192], index: 0, kind: input, shape index: {}]   ;;  %s336_s1 = inlined_call_operand.vmem [shape: bf16[2,8,64], index: 1, kind: output, shape index: {}]  }
   0x1   :  { %v9_v0 = vld [vmem:[%s335_s0] sm:$0xf]  ;;  %v10_v1 = vld [vmem:[%s335_s0 + $0x8] sm:$0xf]  ;;  %257 = vmatprep.subr.bf16.mxu0 %v294_v2  ;;  %263 = vmatprep.subr.bf16.mxu1 %v294_v2  ;;  %v11_v19 = vld [vmem:[%s335_s0 + $0x4] sm:$0xf] }
   0x2   :  { %v243_v3 = vcombine.low %v9_v0, %v9_v0  ;;  %259 = vmatprep.mubr.msk.bf16.mxu0 %vm295_vm0, %v294_v2  ;;  %265 = vmatprep.mubr.msk.bf16.mxu1 %vm295_vm0, %v294_v2  ;;  %v245_v4 = vcombine.low %v10_v1, %v10_v1  ;;  %vm142_vm3 = vcmask 1043456   ;;  %v12_v20 = vld [vmem:[%s335_s0 + $0xc] sm:$0xf]  ;;  %vm236_vm4 = vcmask 519168  }
   0x3   :  { %v144_v21 = vsel %vm142_vm3, %v11_v19, 0  ;;  %v190_v22 = vsel %vm142_vm3, %v12_v20, 0 }
   0x4   :  { %16 = vrot.lane.b32.xlu0 %v243_v3, %s296_s10 }
   0x8   :  { %68 = vrot.lane.b32.xlu0 %v245_v4, %s296_s10 }
  0x76   :  { %v17_v5 = vpop.permute.xlu0 %16 }
  0x77   :  { %v23_v6 = vsel %vm18_vm1, %v17_v5, 0 }
  0x78   :  { %258 = vmatpush3.bf16.xpose.msra.mxu0 %v23_v6 }
  0x79   :  { %269 = vmatprep.subr.bf16.mxu0 %v294_v2 }
  0x7a   :  { %v69_v7 = vpop.permute.xlu0 %68 }
  0x7b   :  { %v74_v8 = vsel %vm18_vm1, %v69_v7, 0 }
  0x7c   :  { %264 = vmatpush3.bf16.xpose.msra.mxu1 %v74_v8 }
  0x7d   :  { %275 = vmatprep.subr.bf16.mxu1 %v294_v2 }
  0x7f   :  { %260 = vmatmul.mubr.msk.bf16.vlgmr.msra.gmra.mrb[0].mxu0 %vm18_vm1, %v9_v0 }
  0x80   :  { %271 = vmatprep.mubr.msk.bf16.mxu0 %vm295_vm0, %v294_v2  ;;  %270 = vmatpush3.bf16.msra.mxu0 %v144_v21 }
  0x83   :  { %266 = vmatmul.mubr.msk.bf16.vlgmr.msra.gmra.mrb[0].mxu1 %vm18_vm1, %v10_v1 }
  0x84   :  { %277 = vmatprep.mubr.msk.bf16.mxu1 %vm295_vm0, %v294_v2  ;;  %276 = vmatpush3.bf16.msra.mxu1 %v190_v22 }
 0x152   :  { %v59_v9 = vpop.f32.mrb[0].mxu0 }
 0x153   :  { %v261_v10 = vpop.f32.mrb[1].mxu0  ;;  %v117_v11 = vsel %vm116_vm2, %v59_v9, -inf }
 0x154   :  { %118 = vmax.xlane.f32.xlu1 %v117_v11  ;;  %v62_v12 = vpop.f32.mrb[2].mxu0 }
 0x155   :  { %v262_v13 = vpop.f32.mrb[3].mxu0 }
 0x156   :  { %v110_v14 = vpop.f32.mrb[0].mxu1 }
 0x157   :  { %v267_v15 = vpop.f32.mrb[1].mxu1  ;;  %v120_v16 = vsel %vm116_vm2, %v110_v14, -inf }
 0x158   :  { %121 = vmax.xlane.f32.xlu1 %v120_v16  ;;  %v113_v17 = vpop.f32.mrb[2].mxu1 }
 0x159   :  { %v268_v18 = vpop.f32.mrb[3].mxu1 }
 0x1e1   :  { %v119_v23 = vpop.xlane.xlu1 %118 }
 0x1e2   :  { %v123_v24 = vsub.f32 %v59_v9, %v119_v23 }
 0x1e4   :  { %v125_v25 = vmul.f32 1.442695, %v123_v24 }
 0x1e5   :  { %v122_v26 = vpop.xlane.xlu1 %121 }
 0x1e6   :  { %286 = vpow2.f32 %v125_v25  ;;  %v124_v27 = vsub.f32 %v110_v14, %v122_v26 }
 0x1e8   :  { %v127_v28 = vmul.f32 1.442695, %v124_v27 }
 0x1ea   :  { %288 = vpow2.f32 %v127_v28 }
 0x1f0   :  { %v287_v29 = vpop.eup %286 }
 0x1f1   :  { %v129_v30 = vsel %vm116_vm2, %v287_v29, 0.0  ;;  %v137_v31 = vpack.c.bf16 %v287_v29, %v287_v29 }
 0x1f2   :  { %130 = vadd.xlane.f32.xlu0 %v129_v30 }
 0x1f3   :  { %272 = vmatmul.mubr.msk.bf16.vlgmr.msra.gmra.mrb[4].mxu0 %vm116_vm2, %v137_v31 }
 0x1f4   :  { %v289_v32 = vpop.eup %288 }
 0x1f5   :  { %v132_v33 = vsel %vm116_vm2, %v289_v32, 0.0  ;;  %v138_v34 = vpack.c.bf16 %v289_v32, %v289_v32 }
 0x1f6   :  { %133 = vadd.xlane.f32.xlu1 %v132_v33 }
 0x1f7   :  { %278 = vmatmul.mubr.msk.bf16.vlgmr.msra.gmra.mrb[4].mxu1 %vm116_vm2, %v138_v34 }
 0x27f   :  { %v131_v35 = vpop.xlane.xlu0 %130 }
 0x280   :  { %290 = vrcp.f32 %v131_v35 }
 0x283   :  { %v134_v36 = vpop.xlane.xlu1 %133 }
 0x284   :  { %292 = vrcp.f32 %v134_v36 }
 0x28a   :  { %v291_v37 = vpop.eup %290 }
 0x28e   :  { %v293_v44 = vpop.eup %292 }
 0x2c6   :  { %v180_v38 = vpop.f32.mrb[4].mxu0 }
 0x2c7   :  { %v232_v39 = vmul.f32 %v291_v37, %v180_v38  ;;  %v273_v40 = vpop.f32.mrb[5].mxu0 }
 0x2c8   :  { %v183_v41 = vpop.f32.mrb[6].mxu0 }
 0x2c9   :  { %v234_v42 = vpack.c.bf16 %v232_v39, %v232_v39  ;;  %v274_v43 = vpop.f32.mrb[7].mxu0 }
 0x2ca   :  { %v226_v45 = vpop.f32.mrb[4].mxu1 }
 0x2cb   :  { %237 = vst.msk [vmem:[%s336_s1] sm:$0xf] %vm236_vm4, %v234_v42  ;;  %v233_v46 = vmul.f32 %v293_v44, %v226_v45  ;;  %v279_v47 = vpop.f32.mrb[5].mxu1 }
 0x2cc   :  { %v229_v48 = vpop.f32.mrb[6].mxu1 }
 0x2cd   :  { %v235_v49 = vpack.c.bf16 %v233_v46, %v233_v46  ;;  %v280_v50 = vpop.f32.mrb[7].mxu1 }
 0x2cf   :  { %238 = vst.msk [vmem:[%s336_s1 + $0x4] sm:$0xf] %vm236_vm4, %v235_v49 }

// kernel: transformer_diarization_forward.9
= control target key start
LH: loop header
LB: loop body
LE: loop exit
PB: predicated region body
PF: predicated region fallthrough
CT: control target
= control target key end

     0   :  { %vm25_vm0 = vcmask 523264   ;;  %v229_v22 = vmov 0   ;;  %v80_v40 = vlaneseq  ;;  %vm188_vm1 = vcmask 1043456   ;;  %s310_s0 = inlined_call_operand.vmem [shape: f32[16,64], index: 0, kind: input, shape index: {}]   ;;  %s311_s3 = inlined_call_operand.vmem [shape: bf16[64,192], index: 3, kind: input, shape index: {}]   ;;  %s312_s1 = inlined_call_operand.vmem [shape: f32[1,64], index: 1, kind: input, shape index: {}]   ;;  %s313_s2 = inlined_call_operand.vmem [shape: f32[1,64], index: 2, kind: input, shape index: {}]   ;;  %s314_s4 = inlined_call_operand.vmem [shape: f32[1,192], index: 4, kind: input, shape index: {}]   ;;  %s315_s5 = inlined_call_operand.vmem [shape: bf16[16,192], index: 5, kind: output, shape index: {}]  }
   0x1   :  { %v21_v0 = vld [vmem:[%s310_s0] sm:$0xff]  ;;  %v22_v1 = vld [vmem:[%s310_s0 + $0x8] sm:$0xff]  ;;  %v216_v16 = vld [vmem:[%s311_s3 + $0x14] ss:$8 sps:$4 sm:$0xff]   ;;  %165 = vmatprep.mubr.bf16.mxu0 %v229_v22  ;;  %vm189_vm2 = vcmask 523268  }
   0x2   :  { %v26_v2 = vsel %vm25_vm0, %v21_v0, 0.0  ;;  %v29_v3 = vsel %vm25_vm0, %v22_v1, 0.0  ;;  %v213_v14 = vld [vmem:[%s311_s3 + $0x4] ss:$8 sps:$4 sm:$0xff]   ;;  %v215_v15 = vld [vmem:[%s311_s3] ss:$8 sps:$4 sm:$0xff]   ;;  %vm190_vm3 = vmor %vm189_vm2, %vm188_vm1 }
   0x3   :  { %27 = vadd.xlane.f32.xlu0 %v26_v2  ;;  %133 = vmatprep.subr.bf16.mxu0 %v213_v14  ;;  %v218_v17 = vld [vmem:[%s311_s3 + $0x10] ss:$8 sps:$4 sm:$0xff]   ;;  %v219_v18 = vld [vmem:[%s311_s3 + $0x24] ss:$8 sps:$4 sm:$0xff]   ;;  %v221_v19 = vld [vmem:[%s311_s3 + $0x20] ss:$8 sps:$4 sm:$0xff]  }
   0x4   :  { %134 = vmatpush1.bf16.msra.mxu0 %v215_v15  ;;  %v222_v20 = vld [vmem:[%s311_s3 + $0x34] ss:$8 sps:$4 sm:$0xff]   ;;  %v224_v21 = vld [vmem:[%s311_s3 + $0x30] ss:$8 sps:$4 sm:$0xff]   ;;  %v197_v31 = vld [vmem:[%s312_s1] ss:$0 sm:$0xff] }
   0x5   :  { %135 = vmatprep.subr.bf16.mxu0 %v216_v16  ;;  %v198_v35 = vld [vmem:[%s313_s2] ss:$0 sm:$0xff]  ;;  %v81_v41 = vshrl.u32 %v80_v40, 7 }
   0x6   :  { %v78_v43 = vld [vmem:[%s314_s4] sm:$0x3] }
   0x7   :  { %30 = vadd.xlane.f32.xlu0 %v29_v3  ;;  %v82_v42 = vsub.s32 0, %v81_v41  ;;  %v86_v44 = vsub.s32 1, %v81_v41 }
   0x8   :  { %136 = vmatpush1.bf16.msra.mxu0 %v218_v17 }
   0x9   :  { %137 = vmatprep.subr.bf16.mxu0 %v219_v18  ;;  %v83_v45 = vrot.slane %v78_v43, %v82_v42  ;;  %v87_v46 = vrot.slane %v78_v43, %v86_v44 }
   0xc   :  { %138 = vmatpush1.bf16.msra.mxu0 %v221_v19 }
   0xd   :  { %139 = vmatprep.subr.bf16.mxu0 %v222_v20 }
  0x10   :  { %140 = vmatpush1.bf16.msra.mxu0 %v224_v21 }
  0x90   :  { %v28_v4 = vpop.xlane.xlu0 %27 }
  0x91   :  { %v33_v5 = vmul.f32 0.015625, %v28_v4 }
  0x93   :  { %v35_v6 = vsub.f32 %v21_v0, %v33_v5 }
  0x94   :  { %v31_v7 = vpop.xlane.xlu0 %30 }
  0x95   :  { %v34_v8 = vmul.f32 0.015625, %v31_v7  ;;  %v37_v9 = vmul.f32 %v35_v6, %v35_v6 }
  0x97   :  { %v36_v10 = vsub.f32 %v22_v1, %v34_v8  ;;  %v39_v11 = vsel %vm25_vm0, %v37_v9, 0.0 }
  0x98   :  { %40 = vadd.xlane.f32.xlu1 %v39_v11 }
  0x99   :  { %v38_v12 = vmul.f32 %v36_v10, %v36_v10 }
  0x9b   :  { %v42_v13 = vsel %vm25_vm0, %v38_v12, 0.0 }
  0x9c   :  { %43 = vadd.xlane.f32.xlu1 %v42_v13 }
 0x125   :  { %v41_v23 = vpop.xlane.xlu1 %40 }
 0x126   :  { %v45_v24 = vmul.f32 0.015625, %v41_v23 }
 0x128   :  { %v47_v25 = vadd.f32 1e-12, %v45_v24 }
 0x129   :  { %v44_v26 = vpop.xlane.xlu1 %43 }
 0x12a   :  { %225 = vrsqrt.f32 %v47_v25  ;;  %v46_v27 = vmul.f32 0.015625, %v44_v26 }
 0x12c   :  { %v48_v28 = vadd.f32 1e-12, %v46_v27 }
 0x12e   :  { %227 = vrsqrt.f32 %v48_v28 }
 0x134   :  { %v226_v29 = vpop.eup %225 }
 0x135   :  { %v51_v30 = vmul.f32 %v226_v29, %v35_v6 }
 0x137   :  { %v59_v34 = vmul.f32 %v197_v31, %v51_v30 }
 0x138   :  { %v228_v32 = vpop.eup %227 }
 0x139   :  { %v52_v33 = vmul.f32 %v228_v32, %v36_v10  ;;  %v67_v37 = vadd.f32 %v198_v35, %v59_v34 }
 0x13b   :  { %v60_v36 = vmul.f32 %v197_v31, %v52_v33 }
 0x13d   :  { %v68_v38 = vadd.f32 %v198_v35, %v60_v36 }
 0x13f   :  { %v69_v39 = vpack.c.bf16 %v68_v38, %v67_v37 }
 0x141   :  { %207 = vmatmul.mubr.msk.bf16.vlgmr.msra.gmra.mrb[0].mxu0 %vm25_vm0, %v69_v39 }
 0x214   :  { %v167_v47 = vpop.f32.mrb[0].mxu0 }
 0x215   :  { %v168_v48 = vadd.f32 %v167_v47, %v83_v45  ;;  %v169_v49 = vpop.f32.mrb[1].mxu0 }
 0x216   :  { %v170_v50 = vadd.f32 %v169_v49, %v87_v46  ;;  %v171_v51 = vpop.f32.mrb[2].mxu0 }
 0x217   :  { %v172_v52 = vadd.f32 %v171_v51, %v83_v45  ;;  %v173_v53 = vpop.f32.mrb[3].mxu0 }
 0x218   :  { %v210_v54 = vpack.c.bf16 %v170_v50, %v168_v48  ;;  %v174_v55 = vadd.f32 %v173_v53, %v87_v46 }
 0x21a   :  { %191 = vst.msk [vmem:[%s315_s5] sm:$0xff] %vm190_vm3, %v210_v54  ;;  %v211_v56 = vpack.c.bf16 %v174_v55, %v172_v52 }
 0x21c   :  { %192 = vst.msk [vmem:[%s315_s5 + $0x8] sm:$0xff] %vm190_vm3, %v211_v56 }

// kernel: transformer_diarization_forward.11
= control target key start
LH: loop header
LB: loop body
LE: loop exit
PB: predicated region body
PF: predicated region fallthrough
CT: control target
= control target key end

     0   :  { %v493_v0 = vmov 0.0   ;;  %vm494_vm0 = vmmov 0   ;;  %vm82_vm1 = vcmask 523264   ;;  %s668_s2 = inlined_call_operand.vmem [shape: bf16[64,64], index: 2, kind: input, shape index: {}]   ;;  %s669_s0 = inlined_call_operand.vmem [shape: bf16[16,64], index: 0, kind: input, shape index: {}]   ;;  %s670_s3 = inlined_call_operand.vmem [shape: f32[1,64], index: 3, kind: input, shape index: {}]   ;;  %s671_s1 = inlined_call_operand.vmem [shape: f32[16,64], index: 1, kind: input, shape index: {}]   ;;  %s672_s6 = inlined_call_operand.vmem [shape: bf16[64,128], index: 6, kind: input, shape index: {}]   ;;  %s673_s8 = inlined_call_operand.vmem [shape: bf16[128,64], index: 8, kind: input, shape index: {}]   ;;  %s674_s4 = inlined_call_operand.vmem [shape: f32[1,64], index: 4, kind: input, shape index: {}]   ;;  %s675_s5 = inlined_call_operand.vmem [shape: f32[1,64], index: 5, kind: input, shape index: {}]   ;;  %s676_s7 = inlined_call_operand.vmem [shape: f32[1,128], index: 7, kind: input, shape index: {}]   ;;  %s677_s9 = inlined_call_operand.vmem [shape: f32[1,64], index: 9, kind: input, shape index: {}]   ;;  %s678_s10 = inlined_call_operand.vmem [shape: f32[16,64], index: 10, kind: output, shape index: {}]  }
   0x1   :  { %426 = vmatprep.subr.bf16.mxu1 %v493_v0  ;;  %v472_v1 = vld [vmem:[%s668_s2] sm:$0xff]   ;;  %434 = vmatprep.mubr.msk.bf16.mxu1 %vm494_vm0, %v493_v0  ;;  %v473_v2 = vld [vmem:[%s668_s2 + $0x8] sm:$0xff]   ;;  %v474_v3 = vld [vmem:[%s668_s2 + $0x10] sm:$0xff]  }
   0x2   :  { %450 = vmatprep.subr.bf16.mxu0 %v493_v0  ;;  %466 = vmatprep.mubr.msk.bf16.mxu0 %vm494_vm0, %v493_v0  ;;  %v475_v4 = vld [vmem:[%s668_s2 + $0x18] sm:$0xff]   ;;  %v476_v5 = vld [vmem:[%s669_s0] sm:$0xff]   ;;  %v128_v12 = vld [vmem:[%s671_s1 + $0x8] sm:$0xff] }
   0x3   :  { %427 = vmatpush3.bf16.msra.mxu1 %v472_v1  ;;  %v383_v6 = vld [vmem:[%s670_s3] ss:$0 sm:$0xff]  ;;  %v478_v30 = vld [vmem:[%s672_s6 + $0x8] sm:$0xff]   ;;  %v479_v31 = vld [vmem:[%s672_s6 + $0x10] sm:$0xff]  }
   0x4   :  { %428 = vmatprep.subr.bf16.mxu1 %v493_v0  ;;  %v127_v8 = vld [vmem:[%s671_s1] sm:$0xff]  ;;  %v480_v32 = vld [vmem:[%s672_s6 + $0x18] sm:$0xff]   ;;  %v482_v34 = vld [vmem:[%s673_s8 + $0x8] sm:$0xff]  }
   0x5   :  { %v477_v29 = vld [vmem:[%s672_s6] sm:$0xff]   ;;  %v483_v35 = vld [vmem:[%s673_s8 + $0x10] sm:$0xff]   ;;  %v484_v36 = vld [vmem:[%s673_s8 + $0x18] sm:$0xff]  }
   0x6   :  { %v481_v33 = vld [vmem:[%s673_s8] sm:$0xff]   ;;  %v486_v38 = vld [vmem:[%s673_s8 + $0x28] sm:$0xff]   ;;  %v487_v56 = vld [vmem:[%s673_s8 + $0x30] sm:$0xff]  }
   0x7   :  { %429 = vmatpush3.bf16.msra.mxu1 %v473_v2  ;;  %451 = vmatpush3.bf16.msra.mxu0 %v481_v33  ;;  %v485_v37 = vld [vmem:[%s673_s8 + $0x20] sm:$0xff]   ;;  %v488_v57 = vld [vmem:[%s673_s8 + $0x38] sm:$0xff]  }
   0x8   :  { %430 = vmatprep.subr.bf16.mxu1 %v493_v0  ;;  %452 = vmatprep.subr.bf16.mxu0 %v493_v0  ;;  %v390_v47 = vld [vmem:[%s674_s4] ss:$0 sm:$0xff] }
   0x9   :  { %v391_v51 = vld [vmem:[%s675_s5] ss:$0 sm:$0xff] }
   0xa   :  { %v392_v58 = vld [vmem:[%s676_s7] ss:$0 sm:$0xff] }
   0xb   :  { %431 = vmatpush3.bf16.msra.mxu1 %v474_v3  ;;  %453 = vmatpush3.bf16.msra.mxu0 %v482_v34 }
   0xc   :  { %432 = vmatprep.subr.bf16.mxu1 %v493_v0  ;;  %454 = vmatprep.subr.bf16.mxu0 %v493_v0 }
   0xf   :  { %433 = vmatpush3.bf16.msra.mxu1 %v475_v4  ;;  %455 = vmatpush3.bf16.msra.mxu0 %v483_v35 }
  0x10   :  { %438 = vmatprep.subr.bf16.mxu1 %v493_v0  ;;  %456 = vmatprep.subr.bf16.mxu0 %v493_v0 }
  0x12   :  { %435 = vmatmul.mubr.msk.bf16.vlgmr.msra.gmra.mrb[0].mxu1 %vm82_vm1, %v476_v5 }
  0x13   :  { %446 = vmatprep.mubr.msk.bf16.mxu1 %vm494_vm0, %v493_v0  ;;  %439 = vmatpush3.bf16.msra.mxu1 %v477_v29 }
  0x14   :  { %440 = vmatprep.subr.bf16.mxu1 %v493_v0  ;;  %457 = vmatpush3.bf16.msra.mxu0 %v484_v36 }
  0x15   :  { %458 = vmatprep.subr.bf16.mxu0 %v493_v0 }
  0x17   :  { %441 = vmatpush3.bf16.msra.mxu1 %v478_v30 }
  0x18   :  { %442 = vmatprep.subr.bf16.mxu1 %v493_v0  ;;  %459 = vmatpush3.bf16.msra.mxu0 %v485_v37 }
  0x19   :  { %460 = vmatprep.subr.bf16.mxu0 %v493_v0 }
  0x1b   :  { %443 = vmatpush3.bf16.msra.mxu1 %v479_v31 }
  0x1c   :  { %444 = vmatprep.subr.bf16.mxu1 %v493_v0  ;;  %461 = vmatpush3.bf16.msra.mxu0 %v486_v38 }
  0x1d   :  { %462 = vmatprep.subr.bf16.mxu0 %v493_v0 }
  0x1f   :  { %445 = vmatpush3.bf16.msra.mxu1 %v480_v32 }
  0x20   :  { %463 = vmatpush3.bf16.msra.mxu0 %v487_v56 }
  0x21   :  { %464 = vmatprep.subr.bf16.mxu0 %v493_v0  ;;  %v398_v0 = vld [vmem:[%s677_s9] ss:$0 sm:$0xff] }
  0x24   :  { %465 = vmatpush3.bf16.msra.mxu0 %v488_v57 }
  0xe5   :  { %v120_v7 = vpop.f32.mrb[0].mxu1 }
  0xe6   :  { %v121_v9 = vadd.f32 %v383_v6, %v120_v7  ;;  %v436_v10 = vpop.f32.mrb[1].mxu1 }
  0xe7   :  { %v123_v11 = vpop.f32.mrb[2].mxu1 }
  0xe8   :  { %v587_v13 = vadd.f32 %v127_v8, %v121_v9  ;;  %v124_v14 = vadd.f32 %v383_v6, %v123_v11  ;;  %v437_v15 = vpop.f32.mrb[3].mxu1 }
  0xea   :  { %v589_v16 = vadd.f32 %v128_v12, %v124_v14  ;;  %v133_v17 = vsel %vm82_vm1, %v587_v13, 0.0 }
  0xeb   :  { %134 = vadd.xlane.f32.xlu0 %v133_v17 }
  0xec   :  { %v136_v18 = vsel %vm82_vm1, %v589_v16, 0.0 }
  0xef   :  { %137 = vadd.xlane.f32.xlu0 %v136_v18 }
 0x178   :  { %v135_v19 = vpop.xlane.xlu0 %134 }
 0x179   :  { %v140_v20 = vmul.f32 0.015625, %v135_v19 }
 0x17b   :  { %v142_v21 = vsub.f32 %v587_v13, %v140_v20 }
 0x17c   :  { %v138_v22 = vpop.xlane.xlu0 %137 }
 0x17d   :  { %v141_v23 = vmul.f32 0.015625, %v138_v22  ;;  %v144_v24 = vmul.f32 %v142_v21, %v142_v21 }
 0x17f   :  { %v143_v25 = vsub.f32 %v589_v16, %v141_v23  ;;  %v146_v26 = vsel %vm82_vm1, %v144_v24, 0.0 }
 0x180   :  { %147 = vadd.xlane.f32.xlu1 %v146_v26 }
 0x181   :  { %v145_v27 = vmul.f32 %v143_v25, %v143_v25 }
 0x183   :  { %v149_v28 = vsel %vm82_vm1, %v145_v27, 0.0 }
 0x184   :  { %150 = vadd.xlane.f32.xlu1 %v149_v28 }
 0x20d   :  { %v148_v39 = vpop.xlane.xlu1 %147 }
 0x20e   :  { %v152_v40 = vmul.f32 0.015625, %v148_v39 }
 0x210   :  { %v154_v41 = vadd.f32 1e-12, %v152_v40 }
 0x211   :  { %v151_v42 = vpop.xlane.xlu1 %150 }
 0x212   :  { %489 = vrsqrt.f32 %v154_v41  ;;  %v153_v43 = vmul.f32 0.015625, %v151_v42 }
 0x214   :  { %v155_v44 = vadd.f32 1e-12, %v153_v43 }
 0x216   :  { %491 = vrsqrt.f32 %v155_v44 }
 0x21c   :  { %v490_v45 = vpop.eup %489 }
 0x21d   :  { %v158_v46 = vmul.f32 %v490_v45, %v142_v21 }
 0x21f   :  { %v166_v49 = vmul.f32 %v390_v47, %v158_v46 }
 0x220   :  { %v492_v48 = vpop.eup %491 }
 0x221   :  { %v159_v50 = vmul.f32 %v492_v48, %v143_v25  ;;  %v174_v53 = vadd.f32 %v391_v51, %v166_v49 }
 0x223   :  { %v167_v52 = vmul.f32 %v390_v47, %v159_v50 }
 0x225   :  { %v175_v54 = vadd.f32 %v391_v51, %v167_v52 }
 0x227   :  { %v176_v55 = vpack.c.bf16 %v175_v54, %v174_v53 }
 0x229   :  { %447 = vmatmul.mubr.msk.bf16.vlgmr.msra.gmra.mrb[4].mxu1 %vm82_vm1, %v176_v55 }
 0x2fc   :  { %v253_v59 = vpop.f32.mrb[4].mxu1 }
 0x2fd   :  { %v254_v60 = vadd.f32 %v392_v58, %v253_v59  ;;  %v448_v61 = vpop.f32.mrb[5].mxu1 }
 0x2fe   :  { %v256_v62 = vpop.f32.mrb[6].mxu1 }
 0x2ff   :  { %v257_v63 = vadd.f32 %v392_v58, %v256_v62  ;;  %v449_v1 = vpop.f32.mrb[7].mxu1  ;;  %v260_v2 = vmax.f32 %v254_v60, 0.0 }
 0x301   :  { %v261_v3 = vmax.f32 %v257_v63, 0.0 }
 0x303   :  { %v262_v4 = vpack.c.bf16 %v261_v3, %v260_v2 }
 0x305   :  { %467 = vmatmul.mubr.bf16.vlgmr.msra.gmra.mrb[0].mxu0 %v262_v4 }
 0x3d8   :  { %v368_v5 = vpop.f32.mrb[0].mxu0 }
 0x3d9   :  { %v369_v6 = vadd.f32 %v398_v0, %v368_v5  ;;  %v468_v7 = vpop.f32.mrb[1].mxu0 }
 0x3da   :  { %v371_v8 = vpop.f32.mrb[2].mxu0 }
 0x3db   :  { %v375_v9 = vadd.f32 %v369_v6, %v587_v13  ;;  %v372_v10 = vadd.f32 %v398_v0, %v371_v8  ;;  %v469_v11 = vpop.f32.mrb[3].mxu0 }
 0x3dd   :  { %377 = vst.msk [vmem:[%s678_s10] sm:$0xff] %vm82_vm1, %v375_v9  ;;  %v376_v12 = vadd.f32 %v372_v10, %v589_v16 }
 0x3df   :  { %378 = vst.msk [vmem:[%s678_s10 + $0x8] sm:$0xff] %vm82_vm1, %v376_v12 }

// kernel: transformer_diarization_forward.15
= control target key start
LH: loop header
LB: loop body
LE: loop exit
PB: predicated region body
PF: predicated region fallthrough
CT: control target
= control target key end

     0   :  { %vm25_vm0 = vcmask 523264   ;;  %v194_v15 = vmov 0.0   ;;  %vm195_vm1 = vmmov 0   ;;  %s264_s0 = inlined_call_operand.vmem [shape: f32[16,64], index: 0, kind: input, shape index: {}]   ;;  %s265_s3 = inlined_call_operand.vmem [shape: bf16[64,128], index: 3, kind: input, shape index: {}]   ;;  %s266_s1 = inlined_call_operand.vmem [shape: f32[1,64], index: 1, kind: input, shape index: {}]   ;;  %s267_s2 = inlined_call_operand.vmem [shape: f32[1,64], index: 2, kind: input, shape index: {}]   ;;  %s268_s4 = inlined_call_operand.vmem [shape: f32[1,128], index: 4, kind: input, shape index: {}]   ;;  %s269_s5 = inlined_call_operand.vmem [shape: f32[16,128], index: 5, kind: output, shape index: {}]  }
   0x1   :  { %v21_v0 = vld [vmem:[%s264_s0] sm:$0xff]  ;;  %v22_v1 = vld [vmem:[%s264_s0 + $0x8] sm:$0xff]  ;;  %172 = vmatprep.subr.bf16.mxu0 %v194_v15  ;;  %v188_v17 = vld [vmem:[%s265_s3 + $0x10] sm:$0xff]   ;;  %180 = vmatprep.mubr.msk.bf16.mxu0 %vm195_vm1, %v194_v15 }
   0x2   :  { %v26_v2 = vsel %vm25_vm0, %v21_v0, 0.0  ;;  %v29_v3 = vsel %vm25_vm0, %v22_v1, 0.0  ;;  %v186_v14 = vld [vmem:[%s265_s3] sm:$0xff]   ;;  %v187_v16 = vld [vmem:[%s265_s3 + $0x8] sm:$0xff]   ;;  %v189_v18 = vld [vmem:[%s265_s3 + $0x18] sm:$0xff]  }
   0x3   :  { %27 = vadd.xlane.f32.xlu0 %v26_v2  ;;  %173 = vmatpush3.bf16.msra.mxu0 %v186_v14  ;;  %v159_v27 = vld [vmem:[%s266_s1] ss:$0 sm:$0xff] }
   0x4   :  { %174 = vmatprep.subr.bf16.mxu0 %v194_v15  ;;  %v160_v31 = vld [vmem:[%s267_s2] ss:$0 sm:$0xff] }
   0x5   :  { %v161_v36 = vld [vmem:[%s268_s4] ss:$0 sm:$0xff] }
   0x7   :  { %30 = vadd.xlane.f32.xlu0 %v29_v3  ;;  %175 = vmatpush3.bf16.msra.mxu0 %v187_v16 }
   0x8   :  { %176 = vmatprep.subr.bf16.mxu0 %v194_v15 }
   0xb   :  { %177 = vmatpush3.bf16.msra.mxu0 %v188_v17 }
   0xc   :  { %178 = vmatprep.subr.bf16.mxu0 %v194_v15 }
   0xf   :  { %179 = vmatpush3.bf16.msra.mxu0 %v189_v18 }
  0x90   :  { %v28_v4 = vpop.xlane.xlu0 %27 }
  0x91   :  { %v33_v5 = vmul.f32 0.015625, %v28_v4 }
  0x93   :  { %v35_v6 = vsub.f32 %v21_v0, %v33_v5 }
  0x94   :  { %v31_v7 = vpop.xlane.xlu0 %30 }
  0x95   :  { %v34_v8 = vmul.f32 0.015625, %v31_v7  ;;  %v37_v9 = vmul.f32 %v35_v6, %v35_v6 }
  0x97   :  { %v36_v10 = vsub.f32 %v22_v1, %v34_v8  ;;  %v39_v11 = vsel %vm25_vm0, %v37_v9, 0.0 }
  0x98   :  { %40 = vadd.xlane.f32.xlu1 %v39_v11 }
  0x99   :  { %v38_v12 = vmul.f32 %v36_v10, %v36_v10 }
  0x9b   :  { %v42_v13 = vsel %vm25_vm0, %v38_v12, 0.0 }
  0x9c   :  { %43 = vadd.xlane.f32.xlu1 %v42_v13 }
 0x125   :  { %v41_v19 = vpop.xlane.xlu1 %40 }
 0x126   :  { %v45_v20 = vmul.f32 0.015625, %v41_v19 }
 0x128   :  { %v47_v21 = vadd.f32 1e-12, %v45_v20 }
 0x129   :  { %v44_v22 = vpop.xlane.xlu1 %43 }
 0x12a   :  { %190 = vrsqrt.f32 %v47_v21  ;;  %v46_v23 = vmul.f32 0.015625, %v44_v22 }
 0x12c   :  { %v48_v24 = vadd.f32 1e-12, %v46_v23 }
 0x12e   :  { %192 = vrsqrt.f32 %v48_v24 }
 0x134   :  { %v191_v25 = vpop.eup %190 }
 0x135   :  { %v51_v26 = vmul.f32 %v191_v25, %v35_v6 }
 0x137   :  { %v59_v30 = vmul.f32 %v159_v27, %v51_v26 }
 0x138   :  { %v193_v28 = vpop.eup %192 }
 0x139   :  { %v52_v29 = vmul.f32 %v193_v28, %v36_v10  ;;  %v67_v33 = vadd.f32 %v160_v31, %v59_v30 }
 0x13b   :  { %v60_v32 = vmul.f32 %v159_v27, %v52_v29 }
 0x13d   :  { %v68_v34 = vadd.f32 %v160_v31, %v60_v32 }
 0x13f   :  { %v69_v35 = vpack.c.bf16 %v68_v34, %v67_v33 }
 0x141   :  { %181 = vmatmul.mubr.msk.bf16.vlgmr.msra.gmra.mrb[0].mxu0 %vm25_vm0, %v69_v35 }
 0x214   :  { %v146_v37 = vpop.f32.mrb[0].mxu0 }
 0x215   :  { %v147_v38 = vadd.f32 %v161_v36, %v146_v37  ;;  %v182_v39 = vpop.f32.mrb[1].mxu0 }
 0x216   :  { %v149_v40 = vpop.f32.mrb[2].mxu0 }
 0x217   :  { %153 = vst [vmem:[%s269_s5] sm:$0xff] %v147_v38  ;;  %v150_v41 = vadd.f32 %v161_v36, %v149_v40  ;;  %v183_v42 = vpop.f32.mrb[3].mxu0 }
 0x219   :  { %154 = vst [vmem:[%s269_s5 + $0x8] sm:$0xff] %v150_v41 }

</bundles_post_ra>
